<compile_context>
chip_gen: v7x
topology: tpu7x:2x2x1
jax: 0.10.0
libtpu: 0.0.40
codegen_flags: <defaults>
</compile_context>

<pallas_src>
from functools import partial

import jax
import jax.numpy as jnp
from jax.experimental import pallas as pl
from jax.experimental.pallas import tpu as pltpu


def _round_up(v, m):
    return ((v + m - 1) // m) * m


# VMEM earmarked for per-row state (double-buffered I/O blocks + activation
# temporaries). Weights/biases (resident, double-buffered by the pipeline) ride
# on top; everything stays well inside the 48 MiB scoped limit set below.
_ROW_VMEM_BUDGET = 16 * 1024 * 1024


def _choose_tile_n(n, x_dim, y_dim, h_dim, r_dim, cap):
    """Pick the batch tile.

    Goals (per perf review):
      * multiple of 32 rows (bf16 vreg packing is (16, 128) — avoid padded
        sublane pairs / relayouts),
      * several grid steps when N allows (pipelining + v7x megacore sharding),
      * per-step VMEM footprint bounded even for large h_dim so v5e's 16 MiB
        default scoped VMEM and v7x's 64 MiB physical VMEM are never at risk.
    """
    d_in = x_dim + y_dim
    # Live bytes per tile row: double-buffered f32 x/y/out blocks, f32
    # accumulator plus a bf16 copy of h (~2 live), bf16 concat temporary.
    per_row = 2 * (d_in + r_dim) * 4 + h_dim * (4 + 2) * 2 + d_in * 2
    tn = max(32, _ROW_VMEM_BUDGET // per_row)
    tn = min(tn, max(32, cap))
    # Keep >= ~4 grid steps for DMA/compute overlap and cross-TC sharding.
    tn = min(tn, max(128, _round_up(pl.cdiv(n, 4), 32)))
    tn = _round_up(tn, 32)
    if tn >= n:                      # tiny batch: single full-extent step
        tn = max(8, _round_up(n, 8))
    return tn


def _encoder_mlp_kernel(x_ref, y_ref, w1_ref, b1_ref, w2_ref, b2_ref,
                        w3_ref, b3_ref, out_ref):
    """Fused 3-layer MLP on one (TILE_N, *) row tile; weights are VMEM-resident."""
    cd = w1_ref.dtype                                    # compute dtype (bf16)

    # Layer 1: in-kernel lane-axis concat of the f32 tiles (XLU), cast to bf16,
    # single K = x_dim+y_dim matmul with f32 MXU accumulation.
    xy = jnp.concatenate([x_ref[...], y_ref[...]], axis=-1).astype(cd)
    h = jnp.dot(xy, w1_ref[...], preferred_element_type=jnp.float32)
    h = jnp.maximum(h + b1_ref[...], 0.0)                # bias + ReLU in f32 (VPU)

    # Layer 2: Linear + ReLU.
    h = jnp.dot(h.astype(cd), w2_ref[...], preferred_element_type=jnp.float32)
    h = jnp.maximum(h + b2_ref[...], 0.0)

    # Layer 3: Linear (no activation).
    r = jnp.dot(h.astype(cd), w3_ref[...], preferred_element_type=jnp.float32)
    out_ref[...] = (r + b3_ref[...]).astype(out_ref.dtype)


def prepare_encoder_params(params, compute_dtype=jnp.bfloat16):
    """One-time hoist: transpose + cast weights; biases stay f32.

    `params` uses PyTorch nn.Linear conventions:
        w1 (h_dim, x_dim+y_dim), b1 (h_dim,)
        w2 (h_dim, h_dim),       b2 (h_dim,)
        w3 (r_dim, h_dim),       b3 (r_dim,)
    Pass compute_dtype=jnp.float32 if full f32 fidelity is required.
    """
    return {
        "w1": params["w1"].T.astype(compute_dtype),       # (x_dim+y_dim, h_dim)
        "b1": params["b1"].reshape(1, -1).astype(jnp.float32),
        "w2": params["w2"].T.astype(compute_dtype),       # (h_dim, h_dim)
        "b2": params["b2"].reshape(1, -1).astype(jnp.float32),
        "w3": params["w3"].T.astype(compute_dtype),       # (h_dim, r_dim)
        "b3": params["b3"].reshape(1, -1).astype(jnp.float32),
    }


@partial(jax.jit, static_argnames=("tile_n", "out_dtype"))
def encoder_forward(x, y, prepared, tile_n=2048, out_dtype=jnp.float32):
    """Encoder forward: (N, x_dim) f32, (N, y_dim) f32 -> (N, r_dim) out_dtype."""
    n, x_dim = x.shape
    y_dim = y.shape[1]
    d_in, h_dim = prepared["w1"].shape
    r_dim = prepared["w3"].shape[1]
    assert d_in == x_dim + y_dim, (d_in, x_dim, y_dim)

    tn = _choose_tile_n(n, x_dim, y_dim, h_dim, r_dim, tile_n)
    grid = (pl.cdiv(n, tn),)

    # Batch-tiled, software-pipelined streams (f32 in, out_dtype out).
    row_spec = lambda d: pl.BlockSpec((tn, d), lambda i: (i, 0))
    # Constant block index -> DMA'd once, VMEM-resident across the grid.
    resident = lambda shape: pl.BlockSpec(shape, lambda i: (0, 0))

    # Advisory cost estimate for XLA's scheduler.
    w_itemsize = jnp.dtype(prepared["w1"].dtype).itemsize
    out_itemsize = jnp.dtype(out_dtype).itemsize
    mm_elems = d_in * h_dim + h_dim * h_dim + h_dim * r_dim
    flops = 2 * n * mm_elems
    bytes_accessed = (n * d_in * 4                # x, y streamed in as f32
                      + mm_elems * w_itemsize     # resident weights (read once)
                      + (2 * h_dim + r_dim) * 4   # biases
                      + n * r_dim * out_itemsize) # output writeback

    out = pl.pallas_call(
        _encoder_mlp_kernel,
        out_shape=jax.ShapeDtypeStruct((n, r_dim), out_dtype),
        grid=grid,
        in_specs=[
            row_spec(x_dim),                      # x tile (f32, cast in-kernel)
            row_spec(y_dim),                      # y tile (f32, cast in-kernel)
            resident((d_in, h_dim)),              # W1^T  (stays in VMEM)
            resident((1, h_dim)),                 # b1
            resident((h_dim, h_dim)),             # W2^T
            resident((1, h_dim)),                 # b2
            resident((h_dim, r_dim)),             # W3^T
            resident((1, r_dim)),                 # b3
        ],
        out_specs=row_spec(r_dim),
        compiler_params=pltpu.CompilerParams(
            # Megacore-shardable batch axis on v7x; harmless on 1-TC v5e/v6e.
            dimension_semantics=("parallel",),
            # Above the 16/32 MiB default scoped limits, below v7x's 64 MiB
            # physical per-TC. Tile heuristic keeps usage far under this.
            vmem_limit_bytes=48 * 1024 * 1024,
        ),
        cost_estimate=pl.CostEstimate(
            flops=flops, transcendentals=0, bytes_accessed=bytes_accessed),
    )(x, y,
      prepared["w1"], prepared["b1"],
      prepared["w2"], prepared["b2"],
      prepared["w3"], prepared["b3"])
    return out


def init_encoder_params(key, x_dim, y_dim, h_dim, r_dim):
    """Deterministic synthetic parameters with PyTorch nn.Linear shapes."""
    ks = jax.random.split(key, 6)
    d_in = x_dim + y_dim

    def lin_init(kw, kb, fan_in, fan_out):
        bound = 1.0 / jnp.sqrt(fan_in)
        w = jax.random.uniform(kw, (fan_out, fan_in), jnp.float32, -bound, bound)
        b = jax.random.uniform(kb, (fan_out,), jnp.float32, -bound, bound)
        return w, b

    w1, b1 = lin_init(ks[0], ks[1], d_in, h_dim)
    w2, b2 = lin_init(ks[2], ks[3], h_dim, h_dim)
    w3, b3 = lin_init(ks[4], ks[5], h_dim, r_dim)
    return {"w1": w1, "b1": b1, "w2": w2, "b2": b2, "w3": w3, "b3": b3}


def encoder_reference(x, y, params):
    """Pure-JAX f32 reference matching the PyTorch forward exactly."""
    h = jnp.concatenate([x, y], axis=1)
    h = jnp.maximum(h @ params["w1"].T + params["b1"], 0.0)
    h = jnp.maximum(h @ params["w2"].T + params["b2"], 0.0)
    return h @ params["w3"].T + params["b3"]


if __name__ == "__main__":
    # Small shapes consistent with the module's forward.
    N, X_DIM, Y_DIM, H_DIM, R_DIM = 8, 16, 8, 32, 16

    key = jax.random.PRNGKey(0)
    kx, ky, kp, kx2, ky2 = jax.random.split(key, 5)
    params = init_encoder_params(kp, X_DIM, Y_DIM, H_DIM, R_DIM)
    prepared = prepare_encoder_params(params)

    # Tolerance loosened vs the f32 reference because matmul operands are bf16
    # (with f32 MXU accumulation).
    TOL = dict(atol=3e-2, rtol=3e-2)

    # Test 1: tiny batch, single grid step.
    x = jax.random.normal(kx, (N, X_DIM), jnp.float32)
    y = jax.random.normal(ky, (N, Y_DIM), jnp.float32)
    out = jax.block_until_ready(encoder_forward(x, y, prepared))
    ref = encoder_reference(x, y, params)
    assert out.shape == (N, R_DIM), out.shape
    assert jnp.allclose(out, ref, **TOL), "mismatch vs reference (small batch)"

    # Test 2: multi-step grid with a partial last tile (exercises pipelining
    # and masked edge stores; row-independent math keeps padded rows harmless).
    N2 = 300
    x2 = jax.random.normal(kx2, (N2, X_DIM), jnp.float32)
    y2 = jax.random.normal(ky2, (N2, Y_DIM), jnp.float32)
    out2 = jax.block_until_ready(encoder_forward(x2, y2, prepared, tile_n=128))
    ref2 = encoder_reference(x2, y2, params)
    assert out2.shape == (N2, R_DIM), out2.shape
    assert jnp.allclose(out2, ref2, **TOL), "mismatch vs reference (tiled batch)"

    print("KERNEL_OK")
</pallas_src>

<mosaic_0001>
module attributes {stable_mosaic.version = 11 : i64} {
  func.func @_encoder_mlp_kernel(%arg0: i32, %arg1: memref<8x16xf32, #tpu.memory_space<vmem>>, %arg2: memref<8x8xf32, #tpu.memory_space<vmem>>, %arg3: memref<24x32xbf16, #tpu.memory_space<vmem>>, %arg4: memref<1x32xf32, #tpu.memory_space<vmem>>, %arg5: memref<32x32xbf16, #tpu.memory_space<vmem>>, %arg6: memref<1x32xf32, #tpu.memory_space<vmem>>, %arg7: memref<32x16xbf16, #tpu.memory_space<vmem>>, %arg8: memref<1x16xf32, #tpu.memory_space<vmem>>, %arg9: memref<8x16xf32, #tpu.memory_space<vmem>>) attributes {dimension_semantics = [#tpu.dimension_semantics<parallel>], iteration_bounds = array<i64: 1>, scalar_prefetch = 0 : i64, scratch_operands = 0 : i64, tpu.core_type = #tpu.core_type<tc>, window_params = [{transform_indices = @transform_0, window_bounds = array<i64: 8, 16>}, {transform_indices = @transform_1, window_bounds = array<i64: 8, 8>}, {pipeline_mode = #tpu.pipeline_mode<synchronous>, transform_indices = @transform_2, window_bounds = array<i64: 24, 32>}, {pipeline_mode = #tpu.pipeline_mode<synchronous>, transform_indices = @transform_3, window_bounds = array<i64: 1, 32>}, {pipeline_mode = #tpu.pipeline_mode<synchronous>, transform_indices = @transform_4, window_bounds = array<i64: 32, 32>}, {pipeline_mode = #tpu.pipeline_mode<synchronous>, transform_indices = @transform_5, window_bounds = array<i64: 1, 32>}, {pipeline_mode = #tpu.pipeline_mode<synchronous>, transform_indices = @transform_6, window_bounds = array<i64: 32, 16>}, {pipeline_mode = #tpu.pipeline_mode<synchronous>, transform_indices = @transform_7, window_bounds = array<i64: 1, 16>}, {transform_indices = @transform_8, window_bounds = array<i64: 8, 16>}]} {
    %c0 = arith.constant 0 : index
    %c0_0 = arith.constant 0 : index
    %0 = vector.load %arg1[%c0, %c0_0] : memref<8x16xf32, #tpu.memory_space<vmem>>, vector<8x16xf32>
    %c0_1 = arith.constant 0 : index
    %c0_2 = arith.constant 0 : index
    %1 = vector.load %arg2[%c0_1, %c0_2] : memref<8x8xf32, #tpu.memory_space<vmem>>, vector<8x8xf32>
    %2 = tpu.concatenate %0, %1 in 1 : vector<8x16xf32>, vector<8x8xf32> -> vector<8x24xf32>
    %3 = arith.truncf %2 : vector<8x24xf32> to vector<8x24xbf16>
    %c0_3 = arith.constant 0 : index
    %c0_4 = arith.constant 0 : index
    %4 = vector.load %arg3[%c0_3, %c0_4] : memref<24x32xbf16, #tpu.memory_space<vmem>>, vector<24x32xbf16>
    %cst = arith.constant dense<0.000000e+00> : vector<8x32xf32>
    %5 = tpu.matmul %3, %4, %cst {dimension_numbers = #tpu.dot_dimension_numbers<[1], [0], [0], [1], [0, 0, 1, 1], [], []>} : vector<8x24xbf16>, vector<24x32xbf16>, vector<8x32xf32> -> vector<8x32xf32>
    %c0_5 = arith.constant 0 : index
    %c0_6 = arith.constant 0 : index
    %6 = vector.load %arg4[%c0_5, %c0_6] : memref<1x32xf32, #tpu.memory_space<vmem>>, vector<1x32xf32>
    %7 = vector.broadcast %6 : vector<1x32xf32> to vector<8x32xf32>
    %8 = arith.addf %5, %7 : vector<8x32xf32>
    %cst_7 = arith.constant 0.000000e+00 : f32
    %9 = vector.broadcast %cst_7 : f32 to vector<8x32xf32>
    %10 = arith.maximumf %8, %9 : vector<8x32xf32>
    %11 = arith.truncf %10 : vector<8x32xf32> to vector<8x32xbf16>
    %c0_8 = arith.constant 0 : index
    %c0_9 = arith.constant 0 : index
    %12 = vector.load %arg5[%c0_8, %c0_9] : memref<32x32xbf16, #tpu.memory_space<vmem>>, vector<32x32xbf16>
    %cst_10 = arith.constant dense<0.000000e+00> : vector<8x32xf32>
    %13 = tpu.matmul %11, %12, %cst_10 {dimension_numbers = #tpu.dot_dimension_numbers<[1], [0], [0], [1], [0, 0, 1, 1], [], []>} : vector<8x32xbf16>, vector<32x32xbf16>, vector<8x32xf32> -> vector<8x32xf32>
    %c0_11 = arith.constant 0 : index
    %c0_12 = arith.constant 0 : index
    %14 = vector.load %arg6[%c0_11, %c0_12] : memref<1x32xf32, #tpu.memory_space<vmem>>, vector<1x32xf32>
    %15 = vector.broadcast %14 : vector<1x32xf32> to vector<8x32xf32>
    %16 = arith.addf %13, %15 : vector<8x32xf32>
    %cst_13 = arith.constant 0.000000e+00 : f32
    %17 = vector.broadcast %cst_13 : f32 to vector<8x32xf32>
    %18 = arith.maximumf %16, %17 : vector<8x32xf32>
    %19 = arith.truncf %18 : vector<8x32xf32> to vector<8x32xbf16>
    %c0_14 = arith.constant 0 : index
    %c0_15 = arith.constant 0 : index
    %20 = vector.load %arg7[%c0_14, %c0_15] : memref<32x16xbf16, #tpu.memory_space<vmem>>, vector<32x16xbf16>
    %cst_16 = arith.constant dense<0.000000e+00> : vector<8x16xf32>
    %21 = tpu.matmul %19, %20, %cst_16 {dimension_numbers = #tpu.dot_dimension_numbers<[1], [0], [0], [1], [0, 0, 1, 1], [], []>} : vector<8x32xbf16>, vector<32x16xbf16>, vector<8x16xf32> -> vector<8x16xf32>
    %c0_17 = arith.constant 0 : index
    %c0_18 = arith.constant 0 : index
    %22 = vector.load %arg8[%c0_17, %c0_18] : memref<1x16xf32, #tpu.memory_space<vmem>>, vector<1x16xf32>
    %23 = vector.broadcast %22 : vector<1x16xf32> to vector<8x16xf32>
    %24 = arith.addf %21, %23 : vector<8x16xf32>
    %c0_19 = arith.constant 0 : index
    %c0_20 = arith.constant 0 : index
    %25 = vector.load %arg9[%c0_19, %c0_20] : memref<8x16xf32, #tpu.memory_space<vmem>>, vector<8x16xf32>
    tpu.vector_store %arg9[%c0_19, %c0_20], %24 {strides = array<i32>} : memref<8x16xf32, #tpu.memory_space<vmem>>, vector<8x16xf32>,
    return
  }
  func.func @transform_0(%arg0: i32) -> (i32, i32) {
    %c0_i32 = arith.constant 0 : i32
    %c0_i32_0 = arith.constant 0 : i32
    return %arg0, %c0_i32 : i32, i32
  }
  func.func @transform_1(%arg0: i32) -> (i32, i32) {
    %c0_i32 = arith.constant 0 : i32
    %c0_i32_0 = arith.constant 0 : i32
    return %arg0, %c0_i32 : i32, i32
  }
  func.func @transform_2(%arg0: i32) -> (i32, i32) {
    %c0_i32 = arith.constant 0 : i32
    %c0_i32_0 = arith.constant 0 : i32
    %c0_i32_1 = arith.constant 0 : i32
    return %c0_i32, %c0_i32_0 : i32, i32
  }
  func.func @transform_3(%arg0: i32) -> (i32, i32) {
    %c0_i32 = arith.constant 0 : i32
    %c0_i32_0 = arith.constant 0 : i32
    %c0_i32_1 = arith.constant 0 : i32
    return %c0_i32, %c0_i32_0 : i32, i32
  }
  func.func @transform_4(%arg0: i32) -> (i32, i32) {
    %c0_i32 = arith.constant 0 : i32
    %c0_i32_0 = arith.constant 0 : i32
    %c0_i32_1 = arith.constant 0 : i32
    return %c0_i32, %c0_i32_0 : i32, i32
  }
  func.func @transform_5(%arg0: i32) -> (i32, i32) {
    %c0_i32 = arith.constant 0 : i32
    %c0_i32_0 = arith.constant 0 : i32
    %c0_i32_1 = arith.constant 0 : i32
    return %c0_i32, %c0_i32_0 : i32, i32
  }
  func.func @transform_6(%arg0: i32) -> (i32, i32) {
    %c0_i32 = arith.constant 0 : i32
    %c0_i32_0 = arith.constant 0 : i32
    %c0_i32_1 = arith.constant 0 : i32
    return %c0_i32, %c0_i32_0 : i32, i32
  }
  func.func @transform_7(%arg0: i32) -> (i32, i32) {
    %c0_i32 = arith.constant 0 : i32
    %c0_i32_0 = arith.constant 0 : i32
    %c0_i32_1 = arith.constant 0 : i32
    return %c0_i32, %c0_i32_0 : i32, i32
  }
  func.func @transform_8(%arg0: i32) -> (i32, i32) {
    %c0_i32 = arith.constant 0 : i32
    %c0_i32_0 = arith.constant 0 : i32
    return %arg0, %c0_i32 : i32, i32
  }
}

</mosaic_0001>

<bundles_post_ra>
// kernel: encoder_forward.1
= control target key start
LH: loop header
LB: loop body
LE: loop exit
PB: predicated region body
PF: predicated region fallthrough
CT: control target
= control target key end

     0   :  { %13 = vsyncpa [#allocation3], 0  ;;  %s533_s0 = inlined_call_operand.hbm [shape: f32[8,16], index: 0, kind: input, shape index: {}]   ;;  %s534_s1 = inlined_call_operand.hbm [shape: f32[8,8], index: 1, kind: input, shape index: {}]   ;;  %s535_s2 = inlined_call_operand.vmem [shape: bf16[24,32], index: 2, kind: input, shape index: {}]   ;;  %s536_s3 = inlined_call_operand.vmem [shape: f32[1,32], index: 3, kind: input, shape index: {}]   ;;  %s537_s4 = inlined_call_operand.vmem [shape: bf16[32,32], index: 4, kind: input, shape index: {}]   ;;  %s538_s5 = inlined_call_operand.vmem [shape: f32[1,32], index: 5, kind: input, shape index: {}]   ;;  %s539_s6 = inlined_call_operand.vmem [shape: bf16[32,16], index: 6, kind: input, shape index: {}]   ;;  %s540_s7 = inlined_call_operand.vmem [shape: f32[1,16], index: 7, kind: input, shape index: {}]   ;;  %s541_s8 = inlined_call_operand.hbm [shape: f32[8,16], index: 8, kind: output, shape index: {}]  }
   0x1   :  { %14 = vsyncpa [#allocation6], 0 }
   0x2   :  { %15 = vsyncpa [#allocation4], 0  ;;  %s414_s27 = smov [#allocation2]   ;;  %s415_s29 = smov [#allocation5]  }
   0x3   :  { %s22_s28 = sshll.u32 %s414_s27, 4  ;;  %s32_s30 = sshll.u32 %s415_s29, 4  ;;  %s23_s28 = int_to_ptr.vmem [resolvable:$true] %s22_s28  ;;  %s33_s30 = int_to_ptr.vmem [resolvable:$true] %s32_s30 }
   0x4   :  { %s342_s11 = scalar_lea.hbm %s533_s0, 128 }
   0x5   :  { %p343_p0 = scmp.ne.s32.totalorder %s533_s0, %s342_s11  ;;  %p346_p1 = scmp.lt.u32.totalorder %s342_s11, %s533_s0 }
   0x7   :  { %p348_p2 = pnand %p346_p1, %p343_p0 }
   0x9   :  { %351 = shalt.err (!%p348_p2)
}
   0xa   :  { %s352_s16 = scalar_lea.vmem %s23_s28, 128  ;;  %p357_p4 = scmp.lt.s32.totalorder %s23_s28, %s23_s28 }
   0xb   :  { %p353_p3 = scmp.ne.s32.totalorder %s23_s28, %s352_s16  ;;  %p358_p5 = scmp.lt.s32.totalorder %s352_s16, %s352_s16 }
   0xd   :  { %p359_p6 = por %p358_p5, %p357_p4 }
   0xf   :  { %p360_p7 = pnand %p359_p6, %p353_p3 }
  0x11   :  { %363 = shalt.err (!%p360_p7)
}
  0x12   :  { %25 = dma.hbm_to_vmem [thread:$0]  %s533_s0, 128, %s23_s28, [#allocation3]  }
  0x13   :  { %s364_s21 = scalar_lea.hbm %s534_s1, 128 }
  0x14   :  { %p365_p8 = scmp.ne.s32.totalorder %s534_s1, %s364_s21  ;;  %p368_p9 = scmp.lt.u32.totalorder %s364_s21, %s534_s1 }
  0x16   :  { %p370_p10 = pnand %p368_p9, %p365_p8 }
  0x18   :  { %373 = shalt.err (!%p370_p10)
}
  0x19   :  { %s374_s26 = scalar_lea.vmem %s33_s30, 128  ;;  %p379_p12 = scmp.lt.s32.totalorder %s33_s30, %s33_s30 }
  0x1a   :  { %p375_p11 = scmp.ne.s32.totalorder %s33_s30, %s374_s26  ;;  %p380_p13 = scmp.lt.s32.totalorder %s374_s26, %s374_s26 }
  0x1c   :  { %p381_p0 = por %p380_p13, %p379_p12 }
  0x1e   :  { %p382_p1 = pnand %p381_p0, %p375_p11 }
  0x20   :  { %385 = shalt.err (!%p382_p1)
}
  0x21   :  { %35 = dma.hbm_to_vmem [thread:$0]  %s534_s1, 128, %s33_s30, [#allocation6]  }
  0x22   :  { %408 = dma.done.wait [#allocation3], 128  }
  0x23   :  { %409 = vsyncadd [#allocation3], 4294967168 }
  0x24   :  { %410 = dma.done.wait [#allocation6], 128  }
  0x25   :  { %411 = vsyncadd [#allocation6], 4294967168  ;;  %v416_v0 = vmov 0.0   ;;  %vm417_vm0 = vmmov 0   ;;  %v56_v1 = vld [vmem:[#allocation5] sm:$0xff]  ;;  %s418_s28 = smov 16  }
  0x26   :  { %306 = vmatprep.subr.bf16.mxu0 %v416_v0  ;;  %314 = vmatprep.subr.bf16.mxu1 %v416_v0  ;;  %v336_v2 = vld [vmem:[%s535_s2] sm:$0xff]   ;;  %vm87_vm1 = vcmask 1043456   ;;  %v337_v3 = vld [vmem:[%s535_s2 + $0x8] ss:$0 sps:$4 sm:$0xff]   ;;  %vm61_vm2 = vcmask 130048   ;;  %vm83_vm3 = vcmask 195584  }
  0x27   :  { %310 = vmatprep.mubr.msk.bf16.mxu0 %vm417_vm0, %v416_v0  ;;  %318 = vmatprep.mubr.msk.bf16.mxu1 %vm417_vm0, %v416_v0  ;;  %v89_v4 = vsel %vm87_vm1, %v337_v3, 0  ;;  %v55_v5 = vld [vmem:[#allocation2] sm:$0xff]  ;;  %v339_v10 = vld [vmem:[%s537_s4 + $0x8] sm:$0xff]   ;;  %vm156_vm4 = vcmask 261120   ;;  %s419_s21 = smov [#allocation7]  }
  0x28   :  { %58 = vrot.lane.b32.xlu0 %v56_v1, %s418_s28  ;;  %307 = vmatpush3.bf16.msra.mxu0 %v336_v2  ;;  %v338_v9 = vld [vmem:[%s537_s4] sm:$0xff]   ;;  %v341_v20 = vld [vmem:[%s539_s6 + $0x8] sm:$0xff]   ;;  %s275_s22 = sshll.u32 %s419_s21, 4  ;;  %s276_s22 = int_to_ptr.vmem [resolvable:$true] %s275_s22 }
  0x29   :  { %308 = vmatprep.subr.bf16.mxu0 %v416_v0  ;;  %315 = vmatpush3.bf16.msra.mxu1 %v338_v9  ;;  %v340_v11 = vld [vmem:[%s539_s6] sm:$0xff]   ;;  %p391_p3 = scmp.lt.s32.totalorder %s276_s22, %s276_s22 }
  0x2a   :  { %316 = vmatprep.subr.bf16.mxu1 %v416_v0  ;;  %v285_v12 = vld [vmem:[%s536_s3] ss:$0 sm:$0xff] }
  0x2b   :  { %v289_v21 = vld [vmem:[%s538_s5] ss:$0 sm:$0xff]  ;;  %s386_s5 = scalar_lea.vmem %s276_s22, 128 }
  0x2c   :  { %309 = vmatpush3.bf16.msra.mxu0 %v89_v4  ;;  %v293_v29 = vld [vmem:[%s540_s7] ss:$0 sm:$0xff]  ;;  %p387_p2 = scmp.ne.s32.totalorder %s276_s22, %s386_s5  ;;  %p392_p4 = scmp.lt.s32.totalorder %s386_s5, %s386_s5 }
  0x2d   :  { %322 = vmatprep.subr.bf16.mxu0 %v416_v0  ;;  %317 = vmatpush3.bf16.msra.mxu1 %v339_v10 }
  0x2e   :  { %p393_p5 = por %p392_p4, %p391_p3 }
  0x30   :  { %p394_p6 = pnand %p393_p5, %p387_p2 }
  0x9a   :  { %v59_v6 = vpop.permute.xlu0 %58 }
  0x9b   :  { %v62_v7 = vsel %vm61_vm2, %v55_v5, %v59_v6 }
  0x9c   :  { %v63_v8 = vpack.c.bf16 %v62_v7, %v62_v7 }
  0x9e   :  { %311 = vmatmul.mubr.msk.bf16.vlgmr.msra.gmra.mrb[0].mxu0 %vm83_vm3, %v63_v8 }
  0x9f   :  { %326 = vmatprep.mubr.msk.bf16.mxu0 %vm417_vm0, %v416_v0  ;;  %323 = vmatpush3.bf16.msra.mxu0 %v340_v11 }
  0xa0   :  { %324 = vmatprep.subr.bf16.mxu0 %v416_v0 }
  0xa3   :  { %325 = vmatpush3.bf16.msra.mxu0 %v341_v20 }
 0x171   :  { %v125_v13 = vpop.f32.mrb[0].mxu0 }
 0x172   :  { %v126_v14 = vadd.f32 %v285_v12, %v125_v13  ;;  %v312_v15 = vpop.f32.mrb[1].mxu0 }
 0x173   :  { %v128_v16 = vpop.f32.mrb[2].mxu0 }
 0x174   :  { %v131_v17 = vmax.f32 %v126_v14, 0.0  ;;  %v313_v18 = vpop.f32.mrb[3].mxu0 }
 0x176   :  { %v132_v19 = vpack.c.bf16 %v131_v17, %v131_v17 }
 0x178   :  { %319 = vmatmul.mubr.msk.bf16.vlgmr.msra.gmra.mrb[0].mxu1 %vm156_vm4, %v132_v19 }
 0x24b   :  { %v194_v22 = vpop.f32.mrb[0].mxu1 }
 0x24c   :  { %v195_v23 = vadd.f32 %v289_v21, %v194_v22  ;;  %v320_v24 = vpop.f32.mrb[1].mxu1 }
 0x24d   :  { %v197_v25 = vpop.f32.mrb[2].mxu1 }
 0x24e   :  { %v200_v26 = vmax.f32 %v195_v23, 0.0  ;;  %v321_v27 = vpop.f32.mrb[3].mxu1 }
 0x250   :  { %v201_v28 = vpack.c.bf16 %v200_v26, %v200_v26 }
 0x252   :  { %327 = vmatmul.mubr.msk.bf16.vlgmr.msra.gmra.mrb[4].mxu0 %vm156_vm4, %v201_v28 }
 0x325   :  { %v262_v30 = vpop.f32.mrb[4].mxu0 }
 0x326   :  { %v263_v31 = vadd.f32 %v293_v29, %v262_v30  ;;  %v328_v32 = vpop.f32.mrb[5].mxu0 }
 0x327   :  { %v265_v33 = vpop.f32.mrb[6].mxu0 }
 0x328   :  { %268 = vst.msk [vmem:[#allocation7] sm:$0xff] %vm61_vm2, %v263_v31  ;;  %v329_v34 = vpop.f32.mrb[7].mxu0 }
 0x329   :  { %397 = shalt.err (!%p394_p6)
}
 0x32a   :  { %s398_s7 = scalar_lea.hbm %s541_s8, 128 }
 0x32b   :  { %p399_p7 = scmp.ne.s32.totalorder %s541_s8, %s398_s7  ;;  %p402_p8 = scmp.lt.u32.totalorder %s398_s7, %s541_s8 }
 0x32d   :  { %p404_p9 = pnand %p402_p8, %p399_p7 }
 0x32f   :  { %407 = shalt.err (!%p404_p9)
}
 0x330   :  { %278 = dma.vmem_to_hbm [thread:$0]  %s276_s22, 128, %s541_s8, [#allocation4]  }
 0x331   :  { %412 = dma.done.wait [#allocation4], 128  }
 0x332   :  { %413 = vsyncadd [#allocation4], 4294967168 }
 0x333   :  { %282 = vsyncpa [#allocation3], 1 }
 0x334   :  { %283 = vsyncpa [#allocation6], 1 }
 0x335   :  { %284 = vsyncpa [#allocation4], 1 }

</bundles_post_ra>
